<compile_context>
chip_gen: v5e
topology: v5e:2x2
jax: 0.10.0
libtpu: 0.0.40
codegen_flags: <defaults>
</compile_context>

<pallas_src>
import functools

import jax
import jax.numpy as jnp
from jax import lax
from jax.experimental import pallas as pl
from jax.experimental.pallas import tpu as pltpu


def _round_up(x, m):
    return ((x + m - 1) // m) * m


# ----------------------------------------------------------------------------
# Pallas kernel: (im2col-matmul) conv + folded-BN bias + ReLU, one M-tile
# ----------------------------------------------------------------------------
def _matmul_bias_relu_kernel(p_ref, w_ref, b_ref, o_ref):
    # p_ref: (TM, Kp)   bf16 im2col patch tile
    # w_ref: (Kp, Cout) bf16 conv weight with BN scale pre-folded
    # b_ref: (1, Cout)  f32 folded BN bias
    acc = jnp.dot(p_ref[...], w_ref[...], preferred_element_type=jnp.float32)
    o_ref[...] = jnp.maximum(acc + b_ref[...], 0.0).astype(o_ref.dtype)


def _im2col(x, ksize, stride, pad):
    """x: (N, H, W, C) -> patches (N*OH*OW, ksize*ksize*C), plus out dims."""
    N, H, W, C = x.shape
    xp = jnp.pad(x, ((0, 0), (pad, pad), (pad, pad), (0, 0)))
    OH = (H + 2 * pad - ksize) // stride + 1
    OW = (W + 2 * pad - ksize) // stride + 1
    cols = []
    for kh in range(ksize):
        for kw in range(ksize):
            cols.append(
                xp[:, kh:kh + stride * OH:stride, kw:kw + stride * OW:stride, :]
            )
    patches = jnp.concatenate(cols, axis=-1)  # (N, OH, OW, ksize*ksize*C)
    return patches.reshape(N * OH * OW, ksize * ksize * C), (N, OH, OW)


def conv_block(x, w_mat, bias, *, ksize=3, stride=2, pad=1,
               out_dtype=jnp.bfloat16, tm_max=512):
    """One ConvBlock.

    x:     (N, H, W, Cin) NHWC activations (any float dtype).
    w_mat: (Kp, Cout) bf16, (kh, kw, cin)-ordered, BN-scale folded, K-padded.
    bias:  (1, Cout) f32 folded BN bias.
    """
    x = x.astype(jnp.bfloat16)                       # bf16 operands for MXU
    patches, (N, OH, OW) = _im2col(x, ksize, stride, pad)
    M, K = patches.shape
    Kp, Cout = w_mat.shape
    if Kp > K:                                       # lane-friendly K padding
        patches = jnp.pad(patches, ((0, 0), (0, Kp - K)))

    # M-tiling: multiples of 8 sublanes, capped so the double-buffered working
    # set (2*TM*Kp + 2*TM*Cout + Kp*Cout) stays well under VMEM on all chips.
    TM = min(tm_max, _round_up(M, 8))
    Mp = _round_up(M, TM)
    if Mp > M:
        patches = jnp.pad(patches, ((0, Mp - M), (0, 0)))

    out = pl.pallas_call(
        _matmul_bias_relu_kernel,
        out_shape=jax.ShapeDtypeStruct((Mp, Cout), out_dtype),
        grid=(Mp // TM,),
        in_specs=[
            pl.BlockSpec((TM, Kp), lambda i: (i, 0)),    # streamed M tiles
            pl.BlockSpec((Kp, Cout), lambda i: (0, 0)),  # resident weight
            pl.BlockSpec((1, Cout), lambda i: (0, 0)),   # resident bias
        ],
        out_specs=pl.BlockSpec((TM, Cout), lambda i: (i, 0)),
        compiler_params=pltpu.CompilerParams(
            dimension_semantics=("parallel",)),          # megacore-shardable
    )(patches, w_mat, bias)

    return out[:M].reshape(N, OH, OW, Cout)


# ----------------------------------------------------------------------------
# Parameter construction (deterministic, synthetic)
# ----------------------------------------------------------------------------
def make_convblock_params(key, cin, cout, ksize=3, eps=1e-5):
    kw_, kg, kb, km, kv = jax.random.split(key, 5)
    # Conv weight in PyTorch layout (Cout, Cin, KH, KW).
    w = jax.random.normal(kw_, (cout, cin, ksize, ksize), jnp.float32) * 0.05
    # BatchNorm (inference / eval mode): fold into scale & bias.
    gamma = 1.0 + 0.1 * jax.random.normal(kg, (cout,), jnp.float32)
    beta = 0.1 * jax.random.normal(kb, (cout,), jnp.float32)
    running_mean = 0.1 * jax.random.normal(km, (cout,), jnp.float32)
    running_var = 1.0 + 0.1 * jax.random.uniform(kv, (cout,), jnp.float32)
    scale = gamma / jnp.sqrt(running_var + eps)
    bias = beta - running_mean * scale

    # (KH*KW*Cin, Cout) matching the im2col (kh, kw, cin) ordering, with the
    # BN scale folded in (one-time constant transform), K zero-padded to a
    # multiple of 32, and cast to bf16 for the MXU.
    K = ksize * ksize * cin
    w_mat = jnp.transpose(w, (2, 3, 1, 0)).reshape(K, cout) * scale[None, :]
    Kp = _round_up(K, 32)
    w_mat = jnp.pad(w_mat, ((0, Kp - K), (0, 0))).astype(jnp.bfloat16)

    return {"w": w, "w_mat": w_mat, "scale": scale,
            "bias": bias.reshape(1, cout)}


def spatial_path(x_nhwc, params):
    # Intermediate activations in bf16, final output in f32.
    x = conv_block(x_nhwc, params[0]["w_mat"], params[0]["bias"],
                   out_dtype=jnp.bfloat16)
    x = conv_block(x, params[1]["w_mat"], params[1]["bias"],
                   out_dtype=jnp.bfloat16)
    x = conv_block(x, params[2]["w_mat"], params[2]["bias"],
                   out_dtype=jnp.float32)
    return x


# ----------------------------------------------------------------------------
# Pure-JAX f32 reference (correctness sanity check)
# ----------------------------------------------------------------------------
def _ref_block(x_nhwc, p):
    y = lax.conv_general_dilated(
        x_nhwc, jnp.transpose(p["w"], (2, 3, 1, 0)),  # HWIO
        window_strides=(2, 2), padding=((1, 1), (1, 1)),
        dimension_numbers=("NHWC", "HWIO", "NHWC"))
    y = y * p["scale"] + p["bias"]
    return jnp.maximum(y, 0.0)


def _ref_spatial_path(x_nhwc, params):
    x = _ref_block(x_nhwc, params[0])
    x = _ref_block(x, params[1])
    x = _ref_block(x, params[2])
    return x


if __name__ == "__main__":
    key = jax.random.PRNGKey(0)
    k_in, k1, k2, k3 = jax.random.split(key, 4)

    # PyTorch-style NCHW input, small shapes: batch=2, C=3, H=W=16
    x_nchw = jax.random.normal(k_in, (2, 3, 16, 16), jnp.float32)
    x_nhwc = jnp.transpose(x_nchw, (0, 2, 3, 1))

    params = [
        make_convblock_params(k1, 3, 64),
        make_convblock_params(k2, 64, 128),
        make_convblock_params(k3, 128, 256),
    ]

    out = jax.block_until_ready(spatial_path(x_nhwc, params))  # (2, 2, 2, 256)
    ref = jax.block_until_ready(_ref_spatial_path(x_nhwc, params))

    assert out.shape == (2, 2, 2, 256), out.shape
    # bf16 operands / bf16 intermediates -> relaxed tolerance vs f32 reference.
    assert jnp.allclose(out, ref, atol=3e-2, rtol=3e-2), (
        "mismatch vs reference, max abs err = "
        f"{float(jnp.max(jnp.abs(out - ref)))}")
    print("KERNEL_OK")
</pallas_src>

<mosaic_0001>
module attributes {stable_mosaic.version = 11 : i64} {
  func.func @_matmul_bias_relu_kernel(%arg0: i32, %arg1: memref<128x32xbf16, #tpu.memory_space<vmem>>, %arg2: memref<32x64xbf16, #tpu.memory_space<vmem>>, %arg3: memref<1x64xf32, #tpu.memory_space<vmem>>, %arg4: memref<128x64xbf16, #tpu.memory_space<vmem>>) attributes {dimension_semantics = [#tpu.dimension_semantics<parallel>], iteration_bounds = array<i64: 1>, scalar_prefetch = 0 : i64, scratch_operands = 0 : i64, tpu.core_type = #tpu.core_type<tc>, window_params = [{transform_indices = @transform_0, window_bounds = array<i64: 128, 32>}, {pipeline_mode = #tpu.pipeline_mode<synchronous>, transform_indices = @transform_1, window_bounds = array<i64: 32, 64>}, {pipeline_mode = #tpu.pipeline_mode<synchronous>, transform_indices = @transform_2, window_bounds = array<i64: 1, 64>}, {transform_indices = @transform_3, window_bounds = array<i64: 128, 64>}]} {
    %c0 = arith.constant 0 : index
    %c0_0 = arith.constant 0 : index
    %0 = vector.load %arg1[%c0, %c0_0] : memref<128x32xbf16, #tpu.memory_space<vmem>>, vector<128x32xbf16>
    %c0_1 = arith.constant 0 : index
    %c0_2 = arith.constant 0 : index
    %1 = vector.load %arg2[%c0_1, %c0_2] : memref<32x64xbf16, #tpu.memory_space<vmem>>, vector<32x64xbf16>
    %cst = arith.constant dense<0.000000e+00> : vector<128x64xf32>
    %2 = tpu.matmul %0, %1, %cst {dimension_numbers = #tpu.dot_dimension_numbers<[1], [0], [0], [1], [0, 0, 1, 1], [], []>} : vector<128x32xbf16>, vector<32x64xbf16>, vector<128x64xf32> -> vector<128x64xf32>
    %c0_3 = arith.constant 0 : index
    %c0_4 = arith.constant 0 : index
    %3 = vector.load %arg3[%c0_3, %c0_4] : memref<1x64xf32, #tpu.memory_space<vmem>>, vector<1x64xf32>
    %4 = vector.broadcast %3 : vector<1x64xf32> to vector<128x64xf32>
    %5 = arith.addf %2, %4 : vector<128x64xf32>
    %cst_5 = arith.constant 0.000000e+00 : f32
    %6 = vector.broadcast %cst_5 : f32 to vector<128x64xf32>
    %7 = arith.maximumf %5, %6 : vector<128x64xf32>
    %8 = arith.truncf %7 : vector<128x64xf32> to vector<128x64xbf16>
    %c0_6 = arith.constant 0 : index
    %c0_7 = arith.constant 0 : index
    %9 = vector.load %arg4[%c0_6, %c0_7] : memref<128x64xbf16, #tpu.memory_space<vmem>>, vector<128x64xbf16>
    tpu.vector_store %arg4[%c0_6, %c0_7], %8 {strides = array<i32>} : memref<128x64xbf16, #tpu.memory_space<vmem>>, vector<128x64xbf16>,
    return
  }
  func.func @transform_0(%arg0: i32) -> (i32, i32) {
    %c0_i32 = arith.constant 0 : i32
    %c0_i32_0 = arith.constant 0 : i32
    return %arg0, %c0_i32 : i32, i32
  }
  func.func @transform_1(%arg0: i32) -> (i32, i32) {
    %c0_i32 = arith.constant 0 : i32
    %c0_i32_0 = arith.constant 0 : i32
    %c0_i32_1 = arith.constant 0 : i32
    return %c0_i32, %c0_i32_0 : i32, i32
  }
  func.func @transform_2(%arg0: i32) -> (i32, i32) {
    %c0_i32 = arith.constant 0 : i32
    %c0_i32_0 = arith.constant 0 : i32
    %c0_i32_1 = arith.constant 0 : i32
    return %c0_i32, %c0_i32_0 : i32, i32
  }
  func.func @transform_3(%arg0: i32) -> (i32, i32) {
    %c0_i32 = arith.constant 0 : i32
    %c0_i32_0 = arith.constant 0 : i32
    return %arg0, %c0_i32 : i32, i32
  }
}

</mosaic_0001>

<bundles_post_ra>
// kernel: tpu_custom_call.1
= control target key start
LH: loop header
LB: loop body
LE: loop exit
PB: predicated region body
PF: predicated region fallthrough
CT: control target
= control target key end

     0   :  { %vm91_vm0 = vcmask 261120   ;;  %vm197_vm1 = vcmask 519168   ;;  %s426_s1 = inlined_call_operand.vmem [shape: bf16[32,64], index: 1, kind: input, shape index: {}]   ;;  %s427_s0 = inlined_call_operand.vmem [shape: bf16[128,32], index: 0, kind: input, shape index: {}]   ;;  %s428_s2 = inlined_call_operand.vmem [shape: f32[1,64], index: 2, kind: input, shape index: {}]   ;;  %s429_s3 = inlined_call_operand.vmem [shape: bf16[128,64], index: 3, kind: output, shape index: {}]  }
   0x1   :  { %v275_v0 = vld [vmem:[%s426_s1 + $0x8] sm:$0xff]  ;;  %v274_v1 = vld [vmem:[%s426_s1] sm:$0xff]  ;;  %v268_v3 = vld [vmem:[%s427_s0 + $0x10] sm:$0xff] }
   0x2   :  { %122 = vmatpush.bf16.msra.mxu0 %v275_v0  ;;  %276 = vmatpush.bf16.msra.mxu1 %v275_v0  ;;  %v266_v2 = vld [vmem:[%s427_s0] sm:$0xff]  ;;  %v272_v5 = vld [vmem:[%s427_s0 + $0x30] sm:$0xff]  ;;  %v267_v6 = vld [vmem:[%s427_s0 + $0x8] sm:$0xff] }
   0x3   :  { %277 = vmatpush.bf16.msra.mxu2 %v275_v0  ;;  %278 = vmatpush.bf16.msra.mxu3 %v275_v0  ;;  %v270_v4 = vld [vmem:[%s427_s0 + $0x20] sm:$0xff]  ;;  %v269_v7 = vld [vmem:[%s427_s0 + $0x18] sm:$0xff]  ;;  %v271_v8 = vld [vmem:[%s427_s0 + $0x28] sm:$0xff] }
   0x4   :  { %v273_v9 = vld [vmem:[%s427_s0 + $0x38] sm:$0xff]  ;;  %v344_v10 = vld [vmem:[%s428_s2] ss:$0 sm:$0xff] }
   0x6   :  { %123 = vmatpush.bf16.msra.mxu0 %v274_v1  ;;  %279 = vmatpush.bf16.msra.mxu1 %v274_v1 }
   0x7   :  { %280 = vmatpush.bf16.msra.mxu2 %v274_v1  ;;  %281 = vmatpush.bf16.msra.mxu3 %v274_v1 }
   0x9   :  { %258 = vmatmul.msk.bf16.vlgmr.msra.gmra.mxu0 %vm91_vm0, %v266_v2  ;;  %260 = vmatmul.msk.bf16.vlgmr.msra.gmra.mxu1 %vm91_vm0, %v268_v3 }
   0xa   :  { %262 = vmatmul.msk.bf16.vlgmr.msra.gmra.mxu2 %vm91_vm0, %v270_v4  ;;  %264 = vmatmul.msk.bf16.vlgmr.msra.gmra.mxu3 %vm91_vm0, %v272_v5 }
  0x19   :  { %259 = vmatmul.msk.bf16.gmra.mxu0 %vm91_vm0, %v267_v6  ;;  %261 = vmatmul.msk.bf16.gmra.mxu1 %vm91_vm0, %v269_v7 }
  0x1a   :  { %263 = vmatmul.msk.bf16.gmra.mxu2 %vm91_vm0, %v271_v8  ;;  %265 = vmatmul.msk.bf16.gmra.mxu3 %vm91_vm0, %v273_v9 }
  0x86   :  { %v125_v11 = vpop.f32.mrf.mxu0  ;;  %v135_v12 = vpop.f32.mrf.mxu1 }
  0x87   :  { %v126_v13 = vadd.f32 %v344_v10, %v125_v11  ;;  %v136_v14 = vadd.f32 %v344_v10, %v135_v12 }
  0x89   :  { %v165_v15 = vmax.f32 %v126_v13, 0.0  ;;  %v169_v16 = vmax.f32 %v136_v14, 0.0 }
  0x8b   :  { %v181_v17 = vpack.c.bf16 %v165_v15, %v165_v15  ;;  %v185_v18 = vpack.c.bf16 %v169_v16, %v169_v16 }
  0x8d   :  { %198 = vst.msk [vmem:[%s429_s3] sm:$0xf] %vm197_vm1, %v181_v17  ;;  %v145_v19 = vpop.f32.mrf.mxu2  ;;  %v155_v20 = vpop.f32.mrf.mxu3 }
  0x8e   :  { %202 = vst.msk [vmem:[%s429_s3 + $0x10] sm:$0xf] %vm197_vm1, %v185_v18  ;;  %v146_v21 = vadd.f32 %v344_v10, %v145_v19  ;;  %v156_v22 = vadd.f32 %v344_v10, %v155_v20  ;;  %v127_v23 = vpop.f32.mrf.mxu0  ;;  %v137_v24 = vpop.f32.mrf.mxu1 }
  0x8f   :  { %v128_v25 = vadd.f32 %v344_v10, %v127_v23  ;;  %v138_v26 = vadd.f32 %v344_v10, %v137_v24 }
  0x90   :  { %v173_v27 = vmax.f32 %v146_v21, 0.0  ;;  %v177_v28 = vmax.f32 %v156_v22, 0.0 }
  0x91   :  { %v166_v29 = vmax.f32 %v128_v25, 0.0  ;;  %v170_v30 = vmax.f32 %v138_v26, 0.0 }
  0x92   :  { %v189_v31 = vpack.c.bf16 %v173_v27, %v173_v27  ;;  %v193_v32 = vpack.c.bf16 %v177_v28, %v177_v28 }
  0x93   :  { %v182_v33 = vpack.c.bf16 %v166_v29, %v166_v29  ;;  %v186_v34 = vpack.c.bf16 %v170_v30, %v170_v30 }
  0x94   :  { %206 = vst.msk [vmem:[%s429_s3 + $0x20] sm:$0xf] %vm197_vm1, %v189_v31 }
  0x95   :  { %210 = vst.msk [vmem:[%s429_s3 + $0x30] sm:$0xf] %vm197_vm1, %v193_v32  ;;  %v147_v35 = vpop.f32.mrf.mxu2  ;;  %v157_v36 = vpop.f32.mrf.mxu3 }
  0x96   :  { %199 = vst.msk [vmem:[%s429_s3 + $0x4] sm:$0xf] %vm197_vm1, %v182_v33  ;;  %v148_v37 = vadd.f32 %v344_v10, %v147_v35  ;;  %v158_v38 = vadd.f32 %v344_v10, %v157_v36  ;;  %v130_v39 = vpop.f32.mrf.mxu0  ;;  %v140_v40 = vpop.f32.mrf.mxu1 }
  0x97   :  { %203 = vst.msk [vmem:[%s429_s3 + $0x14] sm:$0xf] %vm197_vm1, %v186_v34  ;;  %v131_v41 = vadd.f32 %v344_v10, %v130_v39  ;;  %v141_v42 = vadd.f32 %v344_v10, %v140_v40 }
  0x98   :  { %v174_v43 = vmax.f32 %v148_v37, 0.0  ;;  %v178_v44 = vmax.f32 %v158_v38, 0.0 }
  0x99   :  { %v167_v45 = vmax.f32 %v131_v41, 0.0  ;;  %v171_v46 = vmax.f32 %v141_v42, 0.0 }
  0x9a   :  { %v190_v47 = vpack.c.bf16 %v174_v43, %v174_v43  ;;  %v194_v48 = vpack.c.bf16 %v178_v44, %v178_v44 }
  0x9b   :  { %v183_v49 = vpack.c.bf16 %v167_v45, %v167_v45  ;;  %v187_v50 = vpack.c.bf16 %v171_v46, %v171_v46 }
  0x9c   :  { %207 = vst.msk [vmem:[%s429_s3 + $0x24] sm:$0xf] %vm197_vm1, %v190_v47 }
  0x9d   :  { %211 = vst.msk [vmem:[%s429_s3 + $0x34] sm:$0xf] %vm197_vm1, %v194_v48  ;;  %v150_v51 = vpop.f32.mrf.mxu2  ;;  %v160_v52 = vpop.f32.mrf.mxu3 }
  0x9e   :  { %200 = vst.msk [vmem:[%s429_s3 + $0x8] sm:$0xf] %vm197_vm1, %v183_v49  ;;  %v151_v53 = vadd.f32 %v344_v10, %v150_v51  ;;  %v161_v54 = vadd.f32 %v344_v10, %v160_v52  ;;  %v132_v55 = vpop.f32.mrf.mxu0  ;;  %v142_v56 = vpop.f32.mrf.mxu1 }
  0x9f   :  { %204 = vst.msk [vmem:[%s429_s3 + $0x18] sm:$0xf] %vm197_vm1, %v187_v50  ;;  %v133_v57 = vadd.f32 %v344_v10, %v132_v55  ;;  %v143_v58 = vadd.f32 %v344_v10, %v142_v56 }
  0xa0   :  { %v175_v59 = vmax.f32 %v151_v53, 0.0  ;;  %v179_v60 = vmax.f32 %v161_v54, 0.0 }
  0xa1   :  { %v168_v61 = vmax.f32 %v133_v57, 0.0  ;;  %v172_v62 = vmax.f32 %v143_v58, 0.0 }
  0xa2   :  { %v191_v63 = vpack.c.bf16 %v175_v59, %v175_v59  ;;  %v195_v0 = vpack.c.bf16 %v179_v60, %v179_v60 }
  0xa3   :  { %v184_v1 = vpack.c.bf16 %v168_v61, %v168_v61  ;;  %v188_v2 = vpack.c.bf16 %v172_v62, %v172_v62 }
  0xa4   :  { %208 = vst.msk [vmem:[%s429_s3 + $0x28] sm:$0xf] %vm197_vm1, %v191_v63 }
  0xa5   :  { %212 = vst.msk [vmem:[%s429_s3 + $0x38] sm:$0xf] %vm197_vm1, %v195_v0  ;;  %v152_v3 = vpop.f32.mrf.mxu2  ;;  %v162_v4 = vpop.f32.mrf.mxu3 }
  0xa6   :  { %201 = vst.msk [vmem:[%s429_s3 + $0xc] sm:$0xf] %vm197_vm1, %v184_v1  ;;  %v153_v5 = vadd.f32 %v344_v10, %v152_v3  ;;  %v163_v6 = vadd.f32 %v344_v10, %v162_v4 }
  0xa7   :  { %205 = vst.msk [vmem:[%s429_s3 + $0x1c] sm:$0xf] %vm197_vm1, %v188_v2 }
  0xa8   :  { %v176_v7 = vmax.f32 %v153_v5, 0.0  ;;  %v180_v8 = vmax.f32 %v163_v6, 0.0 }
  0xaa   :  { %v192_v9 = vpack.c.bf16 %v176_v7, %v176_v7  ;;  %v196_v11 = vpack.c.bf16 %v180_v8, %v180_v8 }
  0xac   :  { %209 = vst.msk [vmem:[%s429_s3 + $0x2c] sm:$0xf] %vm197_vm1, %v192_v9 }
  0xad   :  { %213 = vst.msk [vmem:[%s429_s3 + $0x3c] sm:$0xf] %vm197_vm1, %v196_v11 }

</bundles_post_ra>
